<compile_context>
chip_gen: v5e
topology: v5e:2x2
jax: 0.10.0
libtpu: 0.0.40
codegen_flags: <defaults>
</compile_context>

<pallas_src>
import functools

import jax
import jax.numpy as jnp
from jax.experimental import pallas as pl
from jax.experimental.pallas import tpu as pltpu

INPUT_DIM = 2
HIDDEN_DIM = 64
N_LAYERS = 4            # 1 input layer + 3 hidden layers + 1 output head
BATCH_TILE = 8192       # max rows per grid step (lane axis); multiple of 128


def _round_up(n, m):
    return ((n + m - 1) // m) * m


def _hedging_mlp_kernel(t_ref,        # (1, TB)      time row
                        x_ref,        # (1, TB)      price row
                        w1_ref,       # (64, 2)      input layer weights (out, in), f32
                        b1_ref,       # (64, 1)      f32
                        wh_ref,       # (3, 64, 64)  hidden weights (out, in), bf16
                        bh_ref,       # (3, 64, 1)   f32
                        w5_ref,       # (64, 1)      output head weights (transposed), f32
                        b5_ref,       # (1, 1)       f32
                        out_ref):     # (1, TB)
    """One batch tile of the 5-layer MLP (4 ReLU layers + linear head)."""
    t_row = t_ref[...].astype(jnp.float32)               # (1, TB)
    x_row = x_ref[...].astype(jnp.float32)               # (1, TB)

    # ---- Layer 1 (K=2): pure VPU -- two broadcast FMAs, no MXU push/pop.
    w1 = w1_ref[...]                                     # (64, 2) f32
    h = w1[:, 0:1] * t_row + w1[:, 1:2] * x_row + b1_ref[...]   # (64, TB) f32
    h = jnp.maximum(h, 0.0)

    # ---- Hidden layers 2..4 (64x64): MXU in bf16, f32 accumulation.
    for l in range(3):                                   # static unroll
        h = jnp.dot(wh_ref[l], h.astype(jnp.bfloat16),
                    preferred_element_type=jnp.float32) + bh_ref[l]
        h = jnp.maximum(h, 0.0)                          # (64, TB) f32

    # ---- Output head (M=1): elementwise multiply + cross-sublane reduce (XLU).
    y = jnp.sum(w5_ref[...] * h, axis=0, keepdims=True) + b5_ref[...]  # (1, TB)
    out_ref[...] = y.astype(out_ref.dtype)


def _full_spec(shape):
    """Un-tiled (replicated across the batch grid) BlockSpec for params."""
    return pl.BlockSpec(shape, lambda i: tuple(0 for _ in shape))


@functools.partial(jax.jit, static_argnames=("batch_tile",))
def hedging_network_forward(t, x, params, batch_tile=BATCH_TILE):
    """Equivalent of HedgingNetwork.forward(t, x, running_max=None).

    t, x: float32 arrays of shape (B,).  Returns float32 (B, 1).
    """
    w1, b1, wh, bh, w5, b5 = params

    B = t.shape[0]
    if B == 0:
        return jnp.zeros((0, 1), jnp.float32)

    # Pre-cast hidden weights for native bf16 MXU pushes (tiny: 24 KiB).
    wh_bf16 = wh.astype(jnp.bfloat16)

    # Batch on the lane axis: (B,) -> (1, B).  No stack / HBM round trip.
    t_row = t.astype(jnp.float32).reshape(1, B)
    x_row = x.astype(jnp.float32).reshape(1, B)

    # Effective tile: lane-aligned; capped at ceil(B/2) so B >= 256 always
    # yields >= 2 grid steps (both v7x TensorCores busy on the parallel axis).
    tb = min(int(batch_tile), _round_up(pl.cdiv(B, 2), 128))
    tb = _round_up(max(tb, 128), 128)
    B_pad = _round_up(B, tb)
    if B_pad != B:
        pad = ((0, 0), (0, B_pad - B))
        t_row = jnp.pad(t_row, pad)
        x_row = jnp.pad(x_row, pad)

    grid = (B_pad // tb,)
    batch_spec = pl.BlockSpec((1, tb), lambda i: (0, i))
    in_specs = [
        batch_spec,                                               # t row tile
        batch_spec,                                               # x row tile
        _full_spec(w1.shape), _full_spec(b1.shape),
        _full_spec(wh_bf16.shape), _full_spec(bh.shape),
        _full_spec(w5.shape), _full_spec(b5.shape),
    ]
    out_spec = pl.BlockSpec((1, tb), lambda i: (0, i))            # lane-dense

    out = pl.pallas_call(
        _hedging_mlp_kernel,
        out_shape=jax.ShapeDtypeStruct((1, B_pad), jnp.float32),
        grid_spec=pltpu.PrefetchScalarGridSpec(
            num_scalar_prefetch=0,
            grid=grid,
            in_specs=in_specs,
            out_specs=out_spec,
        ),
        compiler_params=pltpu.CompilerParams(
            dimension_semantics=("parallel",),
            vmem_limit_bytes=32 * 1024 * 1024),
    )(t_row, x_row, w1, b1, wh_bf16, bh, w5, b5)

    return out[0, :B].reshape(B, 1)


def init_params(key, input_dim=INPUT_DIM, hidden_dim=HIDDEN_DIM,
                n_layers=N_LAYERS):
    """nn.Linear default init (U(-1/sqrt(fan_in), +)), stored transposed.

    Returns (w1, b1, wh, bh, w5, b5) with:
      w1: (hidden, input_dim)   b1: (hidden, 1)
      wh: (n_layers-1, hidden, hidden)   bh: (n_layers-1, hidden, 1)
      w5: (hidden, 1)  (= head weight transposed)   b5: (1, 1)
    """
    dims = [input_dim] + [hidden_dim] * n_layers + [1]
    ws, bs = [], []
    for fan_in, fan_out in zip(dims[:-1], dims[1:]):
        key, kw, kb = jax.random.split(key, 3)
        bound = 1.0 / jnp.sqrt(jnp.float32(fan_in))
        # (out, in) layout so the kernel computes h = W @ h
        w = jax.random.uniform(kw, (fan_out, fan_in), jnp.float32, -bound, bound)
        b = jax.random.uniform(kb, (fan_out, 1), jnp.float32, -bound, bound)
        ws.append(w)
        bs.append(b)

    w1, b1 = ws[0], bs[0]
    wh = jnp.stack(ws[1:-1], axis=0)                   # (n_layers-1, H, H)
    bh = jnp.stack(bs[1:-1], axis=0)                   # (n_layers-1, H, 1)
    w5 = ws[-1].T                                      # (H, 1)
    b5 = bs[-1]                                        # (1, 1)
    return (w1, b1, wh, bh, w5, b5)


def _reference_forward(t, x, params):
    """Pure-JAX f32 reference of the same MLP for a correctness check."""
    w1, b1, wh, bh, w5, b5 = params
    h = jnp.stack([t, x], axis=0).astype(jnp.float32)   # (2, B)
    h = jnp.maximum(w1 @ h + b1, 0.0)
    for l in range(wh.shape[0]):
        h = jnp.maximum(wh[l] @ h + bh[l], 0.0)
    y = w5.T @ h + b5                                   # (1, B)
    return y.T                                          # (B, 1)


if __name__ == "__main__":
    key = jax.random.PRNGKey(0)
    k_params, k_t, k_x = jax.random.split(key, 3)

    params = init_params(k_params)

    # bf16 MXU operands (f32 accumulation) -> loosened tolerance vs f32 reference.
    ATOL = 3e-2
    RTOL = 3e-2

    # Small batch: one (1, 128) tile per input.
    B = 128
    t = jax.random.uniform(k_t, (B,), jnp.float32)               # time in [0, 1)
    x = 1.0 + 0.2 * jax.random.normal(k_x, (B,), jnp.float32)    # stock price

    out = jax.block_until_ready(hedging_network_forward(t, x, params))
    ref = _reference_forward(t, x, params)
    assert out.shape == (B, 1)
    assert jnp.allclose(out, ref, atol=ATOL, rtol=RTOL), "mismatch vs reference"

    # Ragged batch exercising the zero-padding + multi-step grid path.
    B2 = 300
    t2 = jax.random.uniform(k_t, (B2,), jnp.float32)
    x2 = 1.0 + 0.2 * jax.random.normal(k_x, (B2,), jnp.float32)
    out2 = jax.block_until_ready(hedging_network_forward(t2, x2, params))
    ref2 = _reference_forward(t2, x2, params)
    assert out2.shape == (B2, 1)
    assert jnp.allclose(out2, ref2, atol=ATOL, rtol=RTOL), "ragged mismatch"

    print("KERNEL_OK")
</pallas_src>

<mosaic_0001>
module attributes {stable_mosaic.version = 11 : i64} {
  func.func @_hedging_mlp_kernel(%arg0: i32, %arg1: memref<1x128xf32, #tpu.memory_space<vmem>>, %arg2: memref<1x128xf32, #tpu.memory_space<vmem>>, %arg3: memref<64x2xf32, #tpu.memory_space<vmem>>, %arg4: memref<64x1xf32, #tpu.memory_space<vmem>>, %arg5: memref<3x64x64xbf16, #tpu.memory_space<vmem>>, %arg6: memref<3x64x1xf32, #tpu.memory_space<vmem>>, %arg7: memref<64x1xf32, #tpu.memory_space<vmem>>, %arg8: memref<1x1xf32, #tpu.memory_space<vmem>>, %arg9: memref<1x128xf32, #tpu.memory_space<vmem>>) attributes {dimension_semantics = [#tpu.dimension_semantics<parallel>], iteration_bounds = array<i64: 1>, scalar_prefetch = 0 : i64, scratch_operands = 0 : i64, tpu.core_type = #tpu.core_type<tc>, window_params = [{transform_indices = @transform_0, window_bounds = array<i64: 1, 128>}, {transform_indices = @transform_1, window_bounds = array<i64: 1, 128>}, {pipeline_mode = #tpu.pipeline_mode<synchronous>, transform_indices = @transform_2, window_bounds = array<i64: 64, 2>}, {pipeline_mode = #tpu.pipeline_mode<synchronous>, transform_indices = @transform_3, window_bounds = array<i64: 64, 1>}, {pipeline_mode = #tpu.pipeline_mode<synchronous>, transform_indices = @transform_4, window_bounds = array<i64: 3, 64, 64>}, {pipeline_mode = #tpu.pipeline_mode<synchronous>, transform_indices = @transform_5, window_bounds = array<i64: 3, 64, 1>}, {pipeline_mode = #tpu.pipeline_mode<synchronous>, transform_indices = @transform_6, window_bounds = array<i64: 64, 1>}, {pipeline_mode = #tpu.pipeline_mode<synchronous>, transform_indices = @transform_7, window_bounds = array<i64: 1, 1>}, {transform_indices = @transform_8, window_bounds = array<i64: 1, 128>}]} {
    %c0 = arith.constant 0 : index
    %c0_0 = arith.constant 0 : index
    %0 = vector.load %arg1[%c0, %c0_0] : memref<1x128xf32, #tpu.memory_space<vmem>>, vector<1x128xf32>
    %c0_1 = arith.constant 0 : index
    %c0_2 = arith.constant 0 : index
    %1 = vector.load %arg2[%c0_1, %c0_2] : memref<1x128xf32, #tpu.memory_space<vmem>>, vector<1x128xf32>
    %c0_3 = arith.constant 0 : index
    %c0_4 = arith.constant 0 : index
    %2 = vector.load %arg3[%c0_3, %c0_4] : memref<64x2xf32, #tpu.memory_space<vmem>>, vector<64x2xf32>
    %3 = vector.extract_strided_slice %2 {offsets = [0, 0], sizes = [64, 1], strides = [1, 1]} : vector<64x2xf32> to vector<64x1xf32>
    %4 = vector.broadcast %3 : vector<64x1xf32> to vector<64x128xf32>
    %5 = vector.broadcast %0 : vector<1x128xf32> to vector<64x128xf32>
    %6 = arith.mulf %4, %5 : vector<64x128xf32>
    %7 = vector.extract_strided_slice %2 {offsets = [0, 1], sizes = [64, 1], strides = [1, 1]} : vector<64x2xf32> to vector<64x1xf32>
    %8 = vector.broadcast %7 : vector<64x1xf32> to vector<64x128xf32>
    %9 = vector.broadcast %1 : vector<1x128xf32> to vector<64x128xf32>
    %10 = arith.mulf %8, %9 : vector<64x128xf32>
    %11 = arith.addf %6, %10 : vector<64x128xf32>
    %c0_5 = arith.constant 0 : index
    %c0_6 = arith.constant 0 : index
    %12 = vector.load %arg4[%c0_5, %c0_6] : memref<64x1xf32, #tpu.memory_space<vmem>>, vector<64x1xf32>
    %13 = vector.broadcast %12 : vector<64x1xf32> to vector<64x128xf32>
    %14 = arith.addf %11, %13 : vector<64x128xf32>
    %cst = arith.constant 0.000000e+00 : f32
    %15 = vector.broadcast %cst : f32 to vector<64x128xf32>
    %16 = arith.maximumf %14, %15 : vector<64x128xf32>
    %c0_7 = arith.constant 0 : index
    %c0_8 = arith.constant 0 : index
    %c0_9 = arith.constant 0 : index
    %17 = vector.load %arg5[%c0_7, %c0_8, %c0_9] : memref<3x64x64xbf16, #tpu.memory_space<vmem>>, vector<1x64x64xbf16>
    %18 = vector.shape_cast %17 : vector<1x64x64xbf16> to vector<64x64xbf16>
    %19 = arith.truncf %16 : vector<64x128xf32> to vector<64x128xbf16>
    %cst_10 = arith.constant dense<0.000000e+00> : vector<64x128xf32>
    %20 = tpu.matmul %18, %19, %cst_10 {dimension_numbers = #tpu.dot_dimension_numbers<[1], [0], [0], [1], [0, 0, 1, 1], [], []>} : vector<64x64xbf16>, vector<64x128xbf16>, vector<64x128xf32> -> vector<64x128xf32>
    %c0_11 = arith.constant 0 : index
    %c0_12 = arith.constant 0 : index
    %c0_13 = arith.constant 0 : index
    %21 = vector.load %arg6[%c0_11, %c0_12, %c0_13] : memref<3x64x1xf32, #tpu.memory_space<vmem>>, vector<1x64x1xf32>
    %22 = vector.shape_cast %21 : vector<1x64x1xf32> to vector<64x1xf32>
    %23 = vector.broadcast %22 : vector<64x1xf32> to vector<64x128xf32>
    %24 = arith.addf %20, %23 : vector<64x128xf32>
    %cst_14 = arith.constant 0.000000e+00 : f32
    %25 = vector.broadcast %cst_14 : f32 to vector<64x128xf32>
    %26 = arith.maximumf %24, %25 : vector<64x128xf32>
    %c1 = arith.constant 1 : index
    %c0_15 = arith.constant 0 : index
    %c0_16 = arith.constant 0 : index
    %27 = vector.load %arg5[%c1, %c0_15, %c0_16] : memref<3x64x64xbf16, #tpu.memory_space<vmem>>, vector<1x64x64xbf16>
    %28 = vector.shape_cast %27 : vector<1x64x64xbf16> to vector<64x64xbf16>
    %29 = arith.truncf %26 : vector<64x128xf32> to vector<64x128xbf16>
    %cst_17 = arith.constant dense<0.000000e+00> : vector<64x128xf32>
    %30 = tpu.matmul %28, %29, %cst_17 {dimension_numbers = #tpu.dot_dimension_numbers<[1], [0], [0], [1], [0, 0, 1, 1], [], []>} : vector<64x64xbf16>, vector<64x128xbf16>, vector<64x128xf32> -> vector<64x128xf32>
    %c1_18 = arith.constant 1 : index
    %c0_19 = arith.constant 0 : index
    %c0_20 = arith.constant 0 : index
    %31 = vector.load %arg6[%c1_18, %c0_19, %c0_20] : memref<3x64x1xf32, #tpu.memory_space<vmem>>, vector<1x64x1xf32>
    %32 = vector.shape_cast %31 : vector<1x64x1xf32> to vector<64x1xf32>
    %33 = vector.broadcast %32 : vector<64x1xf32> to vector<64x128xf32>
    %34 = arith.addf %30, %33 : vector<64x128xf32>
    %cst_21 = arith.constant 0.000000e+00 : f32
    %35 = vector.broadcast %cst_21 : f32 to vector<64x128xf32>
    %36 = arith.maximumf %34, %35 : vector<64x128xf32>
    %c2 = arith.constant 2 : index
    %c0_22 = arith.constant 0 : index
    %c0_23 = arith.constant 0 : index
    %37 = vector.load %arg5[%c2, %c0_22, %c0_23] : memref<3x64x64xbf16, #tpu.memory_space<vmem>>, vector<1x64x64xbf16>
    %38 = vector.shape_cast %37 : vector<1x64x64xbf16> to vector<64x64xbf16>
    %39 = arith.truncf %36 : vector<64x128xf32> to vector<64x128xbf16>
    %cst_24 = arith.constant dense<0.000000e+00> : vector<64x128xf32>
    %40 = tpu.matmul %38, %39, %cst_24 {dimension_numbers = #tpu.dot_dimension_numbers<[1], [0], [0], [1], [0, 0, 1, 1], [], []>} : vector<64x64xbf16>, vector<64x128xbf16>, vector<64x128xf32> -> vector<64x128xf32>
    %c2_25 = arith.constant 2 : index
    %c0_26 = arith.constant 0 : index
    %c0_27 = arith.constant 0 : index
    %41 = vector.load %arg6[%c2_25, %c0_26, %c0_27] : memref<3x64x1xf32, #tpu.memory_space<vmem>>, vector<1x64x1xf32>
    %42 = vector.shape_cast %41 : vector<1x64x1xf32> to vector<64x1xf32>
    %43 = vector.broadcast %42 : vector<64x1xf32> to vector<64x128xf32>
    %44 = arith.addf %40, %43 : vector<64x128xf32>
    %cst_28 = arith.constant 0.000000e+00 : f32
    %45 = vector.broadcast %cst_28 : f32 to vector<64x128xf32>
    %46 = arith.maximumf %44, %45 : vector<64x128xf32>
    %c0_29 = arith.constant 0 : index
    %c0_30 = arith.constant 0 : index
    %47 = vector.load %arg7[%c0_29, %c0_30] : memref<64x1xf32, #tpu.memory_space<vmem>>, vector<64x1xf32>
    %48 = vector.broadcast %47 : vector<64x1xf32> to vector<64x128xf32>
    %49 = arith.mulf %48, %46 : vector<64x128xf32>
    %cst_31 = arith.constant dense<0.000000e+00> : vector<128xf32>
    %50 = vector.multi_reduction <add>, %49, %cst_31 [0] : vector<64x128xf32> to vector<128xf32>
    %51 = vector.shape_cast %50 : vector<128xf32> to vector<1x128xf32>
    %c0_32 = arith.constant 0 : index
    %c0_33 = arith.constant 0 : index
    %52 = vector.load %arg8[%c0_32, %c0_33] : memref<1x1xf32, #tpu.memory_space<vmem>>, vector<1x1xf32>
    %53 = vector.broadcast %52 : vector<1x1xf32> to vector<1x128xf32>
    %54 = arith.addf %51, %53 : vector<1x128xf32>
    %c0_34 = arith.constant 0 : index
    %c0_35 = arith.constant 0 : index
    %55 = vector.load %arg9[%c0_34, %c0_35] : memref<1x128xf32, #tpu.memory_space<vmem>>, vector<1x128xf32>
    tpu.vector_store %arg9[%c0_34, %c0_35], %54 {strides = array<i32>} : memref<1x128xf32, #tpu.memory_space<vmem>>, vector<1x128xf32>,
    return
  }
  func.func @transform_0(%arg0: i32) -> (i32, i32) {
    %c0_i32 = arith.constant 0 : i32
    %c0_i32_0 = arith.constant 0 : i32
    return %c0_i32, %arg0 : i32, i32
  }
  func.func @transform_1(%arg0: i32) -> (i32, i32) {
    %c0_i32 = arith.constant 0 : i32
    %c0_i32_0 = arith.constant 0 : i32
    return %c0_i32, %arg0 : i32, i32
  }
  func.func @transform_2(%arg0: i32) -> (i32, i32) {
    %c0_i32 = arith.constant 0 : i32
    %c0_i32_0 = arith.constant 0 : i32
    %c0_i32_1 = arith.constant 0 : i32
    return %c0_i32, %c0_i32_0 : i32, i32
  }
  func.func @transform_3(%arg0: i32) -> (i32, i32) {
    %c0_i32 = arith.constant 0 : i32
    %c0_i32_0 = arith.constant 0 : i32
    %c0_i32_1 = arith.constant 0 : i32
    return %c0_i32, %c0_i32_0 : i32, i32
  }
  func.func @transform_4(%arg0: i32) -> (i32, i32, i32) {
    %c0_i32 = arith.constant 0 : i32
    %c0_i32_0 = arith.constant 0 : i32
    %c0_i32_1 = arith.constant 0 : i32
    %c0_i32_2 = arith.constant 0 : i32
    return %c0_i32, %c0_i32_0, %c0_i32_1 : i32, i32, i32
  }
  func.func @transform_5(%arg0: i32) -> (i32, i32, i32) {
    %c0_i32 = arith.constant 0 : i32
    %c0_i32_0 = arith.constant 0 : i32
    %c0_i32_1 = arith.constant 0 : i32
    %c0_i32_2 = arith.constant 0 : i32
    return %c0_i32, %c0_i32_0, %c0_i32_1 : i32, i32, i32
  }
  func.func @transform_6(%arg0: i32) -> (i32, i32) {
    %c0_i32 = arith.constant 0 : i32
    %c0_i32_0 = arith.constant 0 : i32
    %c0_i32_1 = arith.constant 0 : i32
    return %c0_i32, %c0_i32_0 : i32, i32
  }
  func.func @transform_7(%arg0: i32) -> (i32, i32) {
    %c0_i32 = arith.constant 0 : i32
    %c0_i32_0 = arith.constant 0 : i32
    %c0_i32_1 = arith.constant 0 : i32
    return %c0_i32, %c0_i32_0 : i32, i32
  }
  func.func @transform_8(%arg0: i32) -> (i32, i32) {
    %c0_i32 = arith.constant 0 : i32
    %c0_i32_0 = arith.constant 0 : i32
    return %c0_i32, %arg0 : i32, i32
  }
}

</mosaic_0001>

<bundles_post_ra>
// kernel: hedging_network_forward.1
= control target key start
LH: loop header
LB: loop body
LE: loop exit
PB: predicated region body
PF: predicated region fallthrough
CT: control target
= control target key end

     0   :  { %s1135_s0 = inlined_call_operand.vmem [shape: f32[1,128], index: 0, kind: input, shape index: {}]   ;;  %s1136_s1 = inlined_call_operand.vmem [shape: f32[1,128], index: 1, kind: input, shape index: {}]   ;;  %s1137_s2 = inlined_call_operand.vmem [shape: f32[64,2], index: 2, kind: input, shape index: {}]   ;;  %s1138_s3 = inlined_call_operand.vmem [shape: f32[64,1], index: 3, kind: input, shape index: {}]   ;;  %s1139_s4 = inlined_call_operand.vmem [shape: bf16[3,64,64], index: 4, kind: input, shape index: {}]   ;;  %s1140_s5 = inlined_call_operand.vmem [shape: f32[3,64,1], index: 5, kind: input, shape index: {}]   ;;  %s1141_s6 = inlined_call_operand.vmem [shape: f32[64,1], index: 6, kind: input, shape index: {}]   ;;  %s1142_s7 = inlined_call_operand.<no memory space> [shape: f32[1,1], index: 7, kind: input, shape index: {}]   ;;  %s1143_s8 = inlined_call_operand.hbm [shape: f32[1,128], index: 8, kind: output, shape index: {}]  }
   0x1   :  { %v13_v0 = vstv %s1142_s7 }
   0x2   :  { %14 = vst [vmem:[#allocation2] sm:$0x1] %v13_v0 }
   0x3   :  { %v41_v1 = vld [vmem:[%s1137_s2 + $0x30] sm:$0xff]  ;;  %v39_v2 = vld [vmem:[%s1137_s2 + $0x20] sm:$0xff]  ;;  %v854_v3 = vmov 1   ;;  %v855_v4 = vmov 0  }
   0x4   :  { %815 = vset.pattern.permute.xlu1 %v854_v3  ;;  %816 = vset.pattern.permute.xlu2 %v855_v4 }
   0x5   :  { %814 = vset.pattern.permute.xlu0 %v855_v4  ;;  %119 = vperm.xlu1 %815, %v41_v1  }
   0x6   :  { %75 = vperm.xlu0 %814, %v41_v1   ;;  %65 = vperm.xlu2 %816, %v39_v2  }
   0x7   :  { %15 = vsyncpa [#allocation4], 0  ;;  %v42_v5 = vld [vmem:[%s1137_s2 + $0x38] sm:$0xff]  ;;  %v40_v6 = vld [vmem:[%s1137_s2 + $0x28] sm:$0xff]  ;;  %vm289_vm0 = vcmask 523264   ;;  %s686_s25 = sshll.u32 %s1143_s8, 4  ;;  %s687_s25 = int_to_ptr.hbm [resolvable:$true] %s686_s25 }
   0x8   :  { %v151_v7 = vld [vmem:[%s1138_s3 + $0x30] sm:$0xff]  ;;  %v38_v8 = vld [vmem:[%s1137_s2 + $0x18] sm:$0xff]  ;;  %v35_v10 = vld [vmem:[%s1137_s2] sm:$0xff] }
   0x9   :  { %v37_v9 = vld [vmem:[%s1137_s2 + $0x10] sm:$0xff]  ;;  %v152_v11 = vld [vmem:[%s1138_s3 + $0x38] sm:$0xff]  ;;  %v150_v12 = vld [vmem:[%s1138_s3 + $0x28] sm:$0xff] }
   0xa   :  { %v149_v13 = vld [vmem:[%s1138_s3 + $0x20] sm:$0xff]  ;;  %v36_v14 = vld [vmem:[%s1137_s2 + $0x8] sm:$0xff]  ;;  %v147_v15 = vld [vmem:[%s1138_s3 + $0x10] sm:$0xff] }
   0xb   :  { %v148_v16 = vld [vmem:[%s1138_s3 + $0x18] sm:$0xff]  ;;  %v145_v17 = vld [vmem:[%s1138_s3] sm:$0xff]  ;;  %v146_v18 = vld [vmem:[%s1138_s3 + $0x8] sm:$0xff] }
   0xc   :  { %v228_v19 = vld [vmem:[%s1140_s5 + $0x38] sm:$0xff]  ;;  %v225_v20 = vld [vmem:[%s1140_s5 + $0x20] sm:$0xff]  ;;  %v226_v21 = vld [vmem:[%s1140_s5 + $0x28] sm:$0xff] }
   0xd   :  { %123 = vperm.xlu1 %815, %v42_v5   ;;  %v223_v22 = vld [vmem:[%s1140_s5 + $0x10] sm:$0xff]  ;;  %v221_v23 = vld [vmem:[%s1140_s5] sm:$0xff]  ;;  %v222_v24 = vld [vmem:[%s1140_s5 + $0x8] sm:$0xff] }
   0xe   :  { %80 = vperm.xlu0 %814, %v42_v5   ;;  %70 = vperm.xlu2 %816, %v40_v6   ;;  %v730_v25 = vld [vmem:[%s1140_s5 + $0x78] sm:$0xff]  ;;  %v727_v26 = vld [vmem:[%s1140_s5 + $0x60] sm:$0xff]  ;;  %v725_v28 = vld [vmem:[%s1140_s5 + $0x50] sm:$0xff] }
   0xf   :  { %v726_v29 = vld [vmem:[%s1140_s5 + $0x58] sm:$0xff]  ;;  %v724_v31 = vld [vmem:[%s1140_s5 + $0x48] sm:$0xff]  ;;  %v759_v33 = vld [vmem:[%s1140_s5 + $0x80] sm:$0xff] }
  0x10   :  { %v761_v36 = vld [vmem:[%s1140_s5 + $0x90] sm:$0xff]  ;;  %v762_v38 = vld [vmem:[%s1140_s5 + $0x98] sm:$0xff]  ;;  %v1000_v40 = vld [vmem:[%s1135_s0] ss:$0 sm:$0xff] }
  0x11   :  { %v1005_v41 = vld [vmem:[%s1136_s1] ss:$0 sm:$0xff]  ;;  %v764_v42 = vld [vmem:[%s1140_s5 + $0xa8] sm:$0xff]  ;;  %v603_v52 = vld [vmem:[%s1141_s6 + $0x10] sm:$0xff] }
  0x12   :  { %v601_v44 = vld [vmem:[%s1141_s6] sm:$0xff]  ;;  %v227_v53 = vld [vmem:[%s1140_s5 + $0x30] sm:$0xff]  ;;  %v604_v54 = vld [vmem:[%s1141_s6 + $0x18] sm:$0xff] }
  0x13   :  { %v605_v0 = vld [vmem:[%s1141_s6 + $0x20] sm:$0xff]  ;;  %v224_v1 = vld [vmem:[%s1140_s5 + $0x18] sm:$0xff] }
  0x15   :  { %115 = vperm.xlu1 %815, %v40_v6  }
  0x16   :  { %185 = vperm.xlu2 %816, %v151_v7   ;;  %60 = vperm.xlu0 %814, %v38_v8  }
  0x1d   :  { %817 = vset.pattern.permute.xlu1 %v855_v4 }
  0x1e   :  { %55 = vperm.xlu2 %816, %v37_v9   ;;  %45 = vperm.xlu0 %814, %v35_v10  }
  0x1f   :  { %190 = vperm.xlu1 %817, %v152_v11   ;;  %v729_v11 = vld [vmem:[%s1140_s5 + $0x70] sm:$0xff] }
  0x26   :  { %819 = vset.pattern.permute.xlu2 %v854_v3  ;;  %822 = vset.pattern.permute.xlu0 %v854_v3 }
  0x27   :  { %818 = vset.pattern.permute.xlu1 %v854_v3  ;;  %107 = vperm.xlu2 %819, %v38_v8  }
  0x28   :  { %111 = vperm.xlu0 %822, %v39_v2   ;;  %103 = vperm.xlu1 %818, %v37_v9   ;;  %v766_v2 = vld [vmem:[%s1140_s5 + $0xb8] sm:$0xff] }
  0x2f   :  { %821 = vset.pattern.permute.xlu2 %v855_v4 }
  0x30   :  { %820 = vset.pattern.permute.xlu1 %v855_v4  ;;  %180 = vperm.xlu2 %821, %v150_v12   ;;  %v608_v12 = vld [vmem:[%s1141_s6 + $0x38] sm:$0xff] }
  0x31   :  { %175 = vperm.xlu1 %820, %v149_v13   ;;  %99 = vperm.xlu0 %822, %v36_v14  }
  0x38   :  { %823 = vset.pattern.permute.xlu2 %v854_v3 }
  0x39   :  { %50 = vperm.xlu1 %820, %v36_v14   ;;  %95 = vperm.xlu2 %823, %v35_v10   ;;  %v607_v10 = vld [vmem:[%s1141_s6 + $0x30] sm:$0xff] }
  0x3a   :  { %825 = vset.pattern.permute.xlu0 %v855_v4 }
  0x3b   :  { %261 = vperm.xlu0 %825, %v227_v53  }
  0x41   :  { %165 = vperm.xlu1 %820, %v147_v15   ;;  %824 = vset.pattern.permute.xlu2 %v855_v4 }
  0x42   :  { %170 = vperm.xlu2 %824, %v148_v16  }
  0x43   :  { %246 = vperm.xlu0 %825, %v224_v1  }
  0x49   :  { %155 = vperm.xlu1 %820, %v145_v17  }
  0x4a   :  { %160 = vperm.xlu2 %824, %v146_v18  }
  0x4b   :  { %393 = vperm.xlu0 %825, %v729_v11  }
  0x51   :  { %266 = vperm.xlu1 %820, %v228_v19   ;;  %v728_v19 = vld [vmem:[%s1140_s5 + $0x68] sm:$0xff] }
  0x52   :  { %251 = vperm.xlu2 %824, %v225_v20  }
  0x53   :  { %388 = vperm.xlu0 %825, %v728_v19  }
  0x59   :  { %256 = vperm.xlu1 %820, %v226_v21  }
  0x5a   :  { %241 = vperm.xlu2 %824, %v223_v22  }
  0x60   :  { %v977_v27 = vpop.permute.xlu2 %65 }
  0x61   :  { %231 = vperm.xlu1 %820, %v221_v23   ;;  %v90_v13 = vmul.f32 %v1000_v40, %v977_v27 }
  0x62   :  { %236 = vperm.xlu2 %824, %v222_v24  }
  0x68   :  { %v71_v30 = vpop.permute.xlu2 %70 }
  0x69   :  { %398 = vperm.xlu1 %820, %v730_v25   ;;  %v91_v7 = vmul.f32 %v1000_v40, %v71_v30 }
  0x6a   :  { %383 = vperm.xlu2 %824, %v727_v26   ;;  %v723_v26 = vld [vmem:[%s1140_s5 + $0x40] sm:$0xff] }
  0x6b   :  { %363 = vperm.xlu0 %825, %v723_v26  }
  0x70   :  { %v186_v35 = vpop.permute.xlu2 %185 }
  0x71   :  { %373 = vperm.xlu1 %820, %v725_v28  }
  0x72   :  { %378 = vperm.xlu2 %824, %v726_v29  }
  0x77   :  { %v120_v32 = vpop.permute.xlu1 %119 }
  0x78   :  { %v76_v34 = vpop.permute.xlu0 %75  ;;  %v135_v45 = vmul.f32 %v1005_v41, %v120_v32  ;;  %v1015_v47 = vpop.permute.xlu2 %55 }
  0x79   :  { %368 = vperm.xlu1 %820, %v724_v31   ;;  %v92_v46 = vmul.f32 %v1000_v40, %v76_v34  ;;  %v88_v30 = vmul.f32 %v1000_v40, %v1015_v47 }
  0x7a   :  { %494 = vperm.xlu2 %824, %v759_v33  }
  0x7b   :  { %v143_v49 = vadd.f32 %v135_v45, %v92_v46 }
  0x7d   :  { %v199_v57 = vadd.f32 %v186_v35, %v143_v49 }
  0x7f   :  { %v124_v37 = vpop.permute.xlu1 %123  ;;  %v207_v62 = vmax.f32 %v199_v57, 0.0  ;;  %v765_v57 = vld [vmem:[%s1140_s5 + $0xb0] sm:$0xff] }
  0x80   :  { %v81_v39 = vpop.permute.xlu0 %80  ;;  %v136_v50 = vmul.f32 %v1005_v41, %v124_v37 }
  0x81   :  { %504 = vperm.xlu1 %820, %v761_v36   ;;  %v93_v51 = vmul.f32 %v1000_v40, %v81_v39  ;;  %v108_v55 = vpop.permute.xlu2 %107 }
  0x82   :  { %509 = vperm.xlu2 %824, %v762_v38   ;;  %v132_v24 = vmul.f32 %v1005_v41, %v108_v55  ;;  %v760_v38 = vld [vmem:[%s1140_s5 + $0x88] sm:$0xff] }
  0x83   :  { %v144_v56 = vadd.f32 %v136_v50, %v93_v51  ;;  %499 = vperm.xlu0 %825, %v760_v38   ;;  %v788_v55 = vld [vmem:[%s1139_s4 + $0x8] sm:$0xff] }
  0x87   :  { %v116_v43 = vpop.permute.xlu1 %115 }
  0x88   :  { %v61_v48 = vpop.permute.xlu0 %60  ;;  %v134_v3 = vmul.f32 %v1005_v41, %v116_v43 }
  0x89   :  { %519 = vperm.xlu1 %820, %v764_v42   ;;  %v89_v25 = vmul.f32 %v1000_v40, %v61_v48 }
  0x8a   :  { %611 = vperm.xlu2 %824, %v601_v44   ;;  %v181_v5 = vpop.permute.xlu2 %180  ;;  %v142_v8 = vadd.f32 %v134_v3, %v91_v7 }
  0x8b   :  { %v140_v31 = vadd.f32 %v132_v24, %v89_v25 }
  0x8c   :  { %v198_v14 = vadd.f32 %v181_v5, %v142_v8 }
  0x8e   :  { %v206_v20 = vmax.f32 %v198_v14, 0.0 }
  0x90   :  { %v1028_v58 = vpop.permute.xlu0 %45 }
  0x91   :  { %v191_v59 = vpop.permute.xlu1 %190  ;;  %621 = vperm.xlu1 %820, %v603_v52   ;;  %v86_v45 = vmul.f32 %v1000_v40, %v1028_v58  ;;  %v763_v52 = vld [vmem:[%s1140_s5 + $0xa0] sm:$0xff]  ;;  %v789_v58 = vld [vmem:[%s1139_s4 + $0x10] sm:$0xff] }
  0x92   :  { %v200_v60 = vadd.f32 %v191_v59, %v144_v56  ;;  %626 = vperm.xlu2 %824, %v604_v54   ;;  %514 = vperm.xlu0 %825, %v763_v52   ;;  %v602_v56 = vld [vmem:[%s1141_s6 + $0x8] sm:$0xff] }
  0x93   :  { %v96_v18 = vpop.permute.xlu2 %95  ;;  %v606_v59 = vld [vmem:[%s1141_s6 + $0x28] sm:$0xff] }
  0x94   :  { %v208_v61 = vmax.f32 %v200_v60, 0.0  ;;  %v129_v39 = vmul.f32 %v1005_v41, %v96_v18  ;;  %v670_v60 = vld [vmem:[#allocation2] sm:$0x1] }
  0x96   :  { %v220_v63 = vpack.c.bf16 %v208_v61, %v207_v62  ;;  %v137_v48 = vadd.f32 %v129_v39, %v86_v45  ;;  %v790_v61 = vld [vmem:[%s1139_s4 + $0x18] sm:$0xff] }
  0x98   :  { %306 = vmatpush.bf16.msra.mxu0 %v220_v63  ;;  %799 = vmatpush.bf16.msra.mxu3 %v220_v63 }
  0x99   :  { %631 = vperm.xlu1 %820, %v605_v0  }
  0x9a   :  { %v104_v4 = vpop.permute.xlu1 %103  ;;  %529 = vperm.xlu2 %824, %v766_v2   ;;  %v112_v6 = vpop.permute.xlu0 %111  ;;  %616 = vperm.xlu0 %825, %v602_v56  }
  0x9b   :  { %v133_v9 = vmul.f32 %v1005_v41, %v112_v6  ;;  %v131_v27 = vmul.f32 %v1005_v41, %v104_v4 }
  0x9c   :  { %v171_v28 = vpop.permute.xlu2 %170 }
  0x9d   :  { %v141_v15 = vadd.f32 %v133_v9, %v90_v13  ;;  %v196_v32 = vadd.f32 %v171_v28, %v140_v31  ;;  %v139_v35 = vadd.f32 %v131_v27, %v88_v30 }
  0x9f   :  { %v204_v42 = vmax.f32 %v196_v32, 0.0 }
  0xa1   :  { %641 = vperm.xlu1 %820, %v607_v10  }
  0xa2   :  { %646 = vperm.xlu2 %824, %v608_v12   ;;  %524 = vperm.xlu0 %825, %v765_v57  }
  0xa3   :  { %v176_v16 = vpop.permute.xlu1 %175  ;;  %v100_v29 = vpop.permute.xlu0 %99 }
  0xa4   :  { %v197_v17 = vadd.f32 %v176_v16, %v141_v15  ;;  %v130_v34 = vmul.f32 %v1005_v41, %v100_v29  ;;  %v161_v47 = vpop.permute.xlu2 %160 }
  0xa6   :  { %v205_v21 = vmax.f32 %v197_v17, 0.0 }
  0xa8   :  { %v219_v22 = vpack.c.bf16 %v206_v20, %v205_v21 }
  0xaa   :  { %307 = vmatpush.bf16.msra.mxu0 %v219_v22  ;;  %800 = vmatpush.bf16.msra.mxu3 %v219_v22 }
  0xab   :  { %v51_v23 = vpop.permute.xlu1 %50  ;;  %636 = vperm.xlu0 %825, %v606_v59  }
  0xac   :  { %v87_v33 = vmul.f32 %v1000_v40, %v51_v23  ;;  %v787_v40 = vld [vmem:[%s1139_s4] sm:$0xff]  ;;  %v252_v2 = vpop.permute.xlu2 %251 }
  0xad   :  { %v262_v5 = vpop.permute.xlu0 %261 }
  0xae   :  { %v138_v43 = vadd.f32 %v130_v34, %v87_v33  ;;  %v791_v34 = vld [vmem:[%s1139_s4 + $0x20] sm:$0xff] }
  0xb0   :  { %v194_v49 = vadd.f32 %v161_v47, %v138_v43 }
  0xb2   :  { %v202_v53 = vmax.f32 %v194_v49, 0.0 }
  0xb3   :  { %v166_v36 = vpop.permute.xlu1 %165  ;;  %673 = vperm.xlu0 %825, %v670_v60  }
  0xb4   :  { %v195_v37 = vadd.f32 %v166_v36, %v139_v35  ;;  %v242_v7 = vpop.permute.xlu2 %241  ;;  %v792_v35 = vld [vmem:[%s1139_s4 + $0x28] sm:$0xff]  ;;  %v793_v36 = vld [vmem:[%s1139_s4 + $0x30] sm:$0xff] }
  0xb5   :  { %v247_v16 = vpop.permute.xlu0 %246 }
  0xb6   :  { %v203_v44 = vmax.f32 %v195_v37, 0.0  ;;  %v794_v37 = vld [vmem:[%s1139_s4 + $0x38] sm:$0xff] }
  0xb8   :  { %v218_v46 = vpack.c.bf16 %v204_v42, %v203_v44 }
  0xba   :  { %308 = vmatpush.bf16.msra.mxu0 %v218_v46  ;;  %801 = vmatpush.bf16.msra.mxu3 %v218_v46 }
  0xbb   :  { %v156_v50 = vpop.permute.xlu1 %155 }
  0xbc   :  { %v193_v51 = vadd.f32 %v156_v50, %v137_v48  ;;  %v237_v23 = vpop.permute.xlu2 %236 }
  0xbd   :  { %v394_v45 = vpop.permute.xlu0 %393 }
  0xbe   :  { %v201_v41 = vmax.f32 %v193_v51, 0.0 }
  0xc0   :  { %v217_v54 = vpack.c.bf16 %v202_v53, %v201_v41 }
  0xc2   :  { %309 = vmatpush.bf16.msra.mxu0 %v217_v54  ;;  %802 = vmatpush.bf16.msra.mxu3 %v217_v54 }
  0xc3   :  { %v267_v3 = vpop.permute.xlu1 %266 }
  0xc4   :  { %v384_v47 = vpop.permute.xlu2 %383 }
  0xc5   :  { %711 = vmatmul.msk.bf16.vlgmr.msra.gmra.mxu0 %vm289_vm0, %v787_v40  ;;  %712 = vmatmul.msk.bf16.vlgmr.msra.gmra.mxu3 %vm289_vm0, %v788_v55  ;;  %v389_v51 = vpop.permute.xlu0 %388 }
  0xcb   :  { %v257_v9 = vpop.permute.xlu1 %256 }
  0xcc   :  { %v379_v56 = vpop.permute.xlu2 %378 }
  0xd3   :  { %v232_v27 = vpop.permute.xlu1 %231 }
  0xd5   :  { %713 = vmatmul.msk.bf16.gmra.mxu3 %vm289_vm0, %v789_v58 }
  0xdb   :  { %v399_v44 = vpop.permute.xlu1 %398 }
  0xe3   :  { %v374_v49 = vpop.permute.xlu1 %373 }
  0xe5   :  { %714 = vmatmul.msk.bf16.gmra.mxu3 %vm289_vm0, %v790_v61 }
 0x142   :  { %v311_v6 = vpop.f32.mrf.mxu0 }
 0x143   :  { %v312_v28 = vadd.f32 %v311_v6, %v232_v27 }
 0x145   :  { %v331_v32 = vmax.f32 %v312_v28, 0.0 }
 0x148   :  { %v316_v62 = vpop.f32.mrf.mxu3 }
 0x149   :  { %v317_v21 = vadd.f32 %v316_v62, %v242_v7 }
 0x14a   :  { %v313_v20 = vpop.f32.mrf.mxu0 }
 0x14b   :  { %v314_v24 = vadd.f32 %v313_v20, %v237_v23  ;;  %v333_v29 = vmax.f32 %v317_v21, 0.0 }
 0x14d   :  { %v332_v30 = vmax.f32 %v314_v24, 0.0 }
 0x14f   :  { %v348_v33 = vpack.c.bf16 %v332_v30, %v331_v32 }
 0x150   :  { %v318_v63 = vpop.f32.mrf.mxu3 }
 0x151   :  { %v319_v17 = vadd.f32 %v318_v63, %v247_v16  ;;  %v369_v63 = vpop.permute.xlu1 %368 }
 0x153   :  { %v334_v25 = vmax.f32 %v319_v17, 0.0 }
 0x155   :  { %v349_v31 = vpack.c.bf16 %v334_v25, %v333_v29 }
 0x158   :  { %v321_v0 = vpop.f32.mrf.mxu3 }
 0x159   :  { %v322_v13 = vadd.f32 %v321_v0, %v252_v2  ;;  %v505_v16 = vpop.permute.xlu1 %504 }
 0x15b   :  { %v335_v22 = vmax.f32 %v322_v13, 0.0  ;;  %v798_v13 = vld [vmem:[%s1139_s4 + $0x58] sm:$0xff] }
 0x160   :  { %v323_v1 = vpop.f32.mrf.mxu3 }
 0x161   :  { %v324_v11 = vadd.f32 %v323_v1, %v257_v9 }
 0x163   :  { %v336_v18 = vmax.f32 %v324_v11, 0.0  ;;  %v796_v11 = vld [vmem:[%s1139_s4 + $0x48] sm:$0xff] }
 0x165   :  { %v350_v26 = vpack.c.bf16 %v336_v18, %v335_v22  ;;  %v520_v22 = vpop.permute.xlu1 %519 }
 0x168   :  { %v326_v4 = vpop.f32.mrf.mxu3 }
 0x169   :  { %v327_v8 = vadd.f32 %v326_v4, %v262_v5 }
 0x16b   :  { %v337_v14 = vmax.f32 %v327_v8, 0.0 }
 0x16d   :  { %v622_v27 = vpop.permute.xlu1 %621 }
 0x170   :  { %v328_v10 = vpop.f32.mrf.mxu3 }
 0x171   :  { %v329_v12 = vadd.f32 %v328_v10, %v267_v3  ;;  %v364_v3 = vpop.permute.xlu0 %363  ;;  %v795_v10 = vld [vmem:[%s1139_s4 + $0x40] sm:$0xff] }
 0x173   :  { %v338_v15 = vmax.f32 %v329_v12, 0.0  ;;  %v797_v12 = vld [vmem:[%s1139_s4 + $0x50] sm:$0xff]  ;;  %s856_s4 = smov [#allocation3]  }
 0x174   :  { %s684_s0 = sshll.u32 %s856_s4, 4  ;;  %s685_s0 = int_to_ptr.vmem [resolvable:$true] %s684_s0 }
 0x175   :  { %v351_v19 = vpack.c.bf16 %v338_v15, %v337_v14  ;;  %v495_v14 = vpop.permute.xlu2 %494 }
 0x177   :  { %437 = vmatpush.bf16.msrb.mxu0 %v351_v19  ;;  %803 = vmatpush.bf16.msra.mxu1 %v351_v19 }
 0x179   :  { %v500_v15 = vpop.permute.xlu0 %499 }
 0x17b   :  { %438 = vmatpush.bf16.msrb.mxu0 %v350_v26  ;;  %804 = vmatpush.bf16.msra.mxu1 %v350_v26 }
 0x17d   :  { %v510_v18 = vpop.permute.xlu2 %509 }
 0x17f   :  { %439 = vmatpush.bf16.msrb.mxu0 %v349_v31  ;;  %805 = vmatpush.bf16.msra.mxu1 %v349_v31 }
 0x181   :  { %v515_v19 = vpop.permute.xlu0 %514 }
 0x183   :  { %440 = vmatpush.bf16.msrb.mxu0 %v348_v33  ;;  %806 = vmatpush.bf16.msra.mxu1 %v348_v33 }
 0x185   :  { %v612_v23 = vpop.permute.xlu2 %611 }
 0x186   :  { %747 = vmatmul.msk.bf16.vlgmr.msrb.gmra.mxu0 %vm289_vm0, %v791_v34  ;;  %748 = vmatmul.msk.bf16.vlgmr.msra.gmra.mxu1 %vm289_vm0, %v792_v35 }
 0x189   :  { %v617_v25 = vpop.permute.xlu0 %616 }
 0x18d   :  { %v627_v30 = vpop.permute.xlu2 %626 }
 0x196   :  { %749 = vmatmul.msk.bf16.gmra.mxu1 %vm289_vm0, %v793_v36  ;;  %v525_v36 = vpop.permute.xlu0 %524 }
 0x1a6   :  { %750 = vmatmul.msk.bf16.gmra.mxu1 %vm289_vm0, %v794_v37 }
 0x203   :  { %v447_v38 = vpop.f32.mrf.mxu1  ;;  %v442_v48 = vpop.f32.mrf.mxu0 }
 0x204   :  { %v448_v61 = vadd.f32 %v447_v38, %v374_v49  ;;  %v443_v4 = vadd.f32 %v442_v48, %v364_v3 }
 0x206   :  { %v464_v5 = vmax.f32 %v448_v61, 0.0  ;;  %v462_v8 = vmax.f32 %v443_v4, 0.0 }
 0x20b   :  { %v449_v39 = vpop.f32.mrf.mxu1  ;;  %v444_v60 = vpop.f32.mrf.mxu0 }
 0x20c   :  { %v450_v57 = vadd.f32 %v449_v39, %v379_v56  ;;  %v445_v0 = vadd.f32 %v444_v60, %v369_v63  ;;  %v632_v39 = vpop.permute.xlu1 %631 }
 0x20e   :  { %v465_v1 = vmax.f32 %v450_v57, 0.0  ;;  %v463_v6 = vmax.f32 %v445_v0, 0.0 }
 0x210   :  { %v480_v7 = vpack.c.bf16 %v465_v1, %v464_v5  ;;  %v479_v9 = vpack.c.bf16 %v463_v6, %v462_v8 }
 0x213   :  { %v452_v42 = vpop.f32.mrf.mxu1 }
 0x214   :  { %v453_v54 = vadd.f32 %v452_v42, %v384_v47 }
 0x216   :  { %v466_v62 = vmax.f32 %v453_v54, 0.0 }
 0x21b   :  { %v454_v43 = vpop.f32.mrf.mxu1 }
 0x21c   :  { %v455_v41 = vadd.f32 %v454_v43, %v389_v51 }
 0x21e   :  { %v467_v58 = vmax.f32 %v455_v41, 0.0 }
 0x220   :  { %v481_v2 = vpack.c.bf16 %v467_v58, %v466_v62  ;;  %v642_v58 = vpop.permute.xlu1 %641 }
 0x223   :  { %v457_v46 = vpop.f32.mrf.mxu1 }
 0x224   :  { %v458_v50 = vadd.f32 %v457_v46, %v394_v45 }
 0x226   :  { %v468_v40 = vmax.f32 %v458_v50, 0.0  ;;  %v530_v50 = vpop.permute.xlu2 %529 }
 0x22b   :  { %v459_v52 = vpop.f32.mrf.mxu1 }
 0x22c   :  { %v460_v53 = vadd.f32 %v459_v52, %v399_v44 }
 0x22e   :  { %v469_v55 = vmax.f32 %v460_v53, 0.0  ;;  %v647_v1 = vpop.permute.xlu2 %646 }
 0x230   :  { %v482_v59 = vpack.c.bf16 %v469_v55, %v468_v40  ;;  %v637_v55 = vpop.permute.xlu0 %636 }
 0x232   :  { %568 = vmatpush.bf16.msra.mxu0 %v482_v59  ;;  %807 = vmatpush.bf16.msra.mxu2 %v482_v59 }
 0x236   :  { %569 = vmatpush.bf16.msra.mxu0 %v481_v2  ;;  %808 = vmatpush.bf16.msra.mxu2 %v481_v2 }
 0x23a   :  { %570 = vmatpush.bf16.msra.mxu0 %v480_v7  ;;  %809 = vmatpush.bf16.msra.mxu2 %v480_v7 }
 0x23e   :  { %571 = vmatpush.bf16.msra.mxu0 %v479_v9  ;;  %810 = vmatpush.bf16.msra.mxu2 %v479_v9  ;;  %v674_v9 = vpop.permute.xlu0 %673 }
 0x241   :  { %783 = vmatmul.msk.bf16.vlgmr.msra.gmra.mxu0 %vm289_vm0, %v795_v10  ;;  %784 = vmatmul.msk.bf16.vlgmr.msra.gmra.mxu2 %vm289_vm0, %v796_v11  ;;  %v676_v11 = vperm.slane %v674_v9, 0 }
 0x251   :  { %785 = vmatmul.msk.bf16.gmra.mxu2 %vm289_vm0, %v797_v12 }
 0x261   :  { %786 = vmatmul.msk.bf16.gmra.mxu2 %vm289_vm0, %v798_v13 }
 0x2be   :  { %v573_v20 = vpop.f32.mrf.mxu0 }
 0x2bf   :  { %v574_v29 = vadd.f32 %v573_v20, %v495_v14 }
 0x2c1   :  { %v593_v33 = vmax.f32 %v574_v29, 0.0 }
 0x2c3   :  { %v649_v42 = vmul.f32 %v612_v23, %v593_v33 }
 0x2c4   :  { %v578_v17 = vpop.f32.mrf.mxu2 }
 0x2c5   :  { %v579_v34 = vadd.f32 %v578_v17, %v505_v16 }
 0x2c6   :  { %v575_v26 = vpop.f32.mrf.mxu0 }
 0x2c7   :  { %v576_v28 = vadd.f32 %v575_v26, %v500_v15  ;;  %v595_v43 = vmax.f32 %v579_v34, 0.0 }
 0x2c9   :  { %v594_v32 = vmax.f32 %v576_v28, 0.0  ;;  %v651_v51 = vmul.f32 %v622_v27, %v595_v43 }
 0x2cb   :  { %v650_v37 = vmul.f32 %v617_v25, %v594_v32 }
 0x2cc   :  { %v580_v21 = vpop.f32.mrf.mxu2 }
 0x2cd   :  { %v581_v35 = vadd.f32 %v580_v21, %v510_v18  ;;  %v657_v47 = vadd.f32 %v650_v37, %v649_v42 }
 0x2cf   :  { %v596_v44 = vmax.f32 %v581_v35, 0.0  ;;  %v658_v53 = vadd.f32 %v657_v47, %v651_v51 }
 0x2d1   :  { %v652_v52 = vmul.f32 %v627_v30, %v596_v44 }
 0x2d3   :  { %v659_v56 = vadd.f32 %v658_v53, %v652_v52 }
 0x2d4   :  { %v583_v24 = vpop.f32.mrf.mxu2 }
 0x2d5   :  { %v584_v38 = vadd.f32 %v583_v24, %v515_v19 }
 0x2d7   :  { %v597_v48 = vmax.f32 %v584_v38, 0.0 }
 0x2d9   :  { %v653_v54 = vmul.f32 %v632_v39, %v597_v48 }
 0x2db   :  { %v660_v60 = vadd.f32 %v659_v56, %v653_v54 }
 0x2dc   :  { %v585_v31 = vpop.f32.mrf.mxu2 }
 0x2dd   :  { %v586_v45 = vadd.f32 %v585_v31, %v520_v22 }
 0x2df   :  { %v598_v41 = vmax.f32 %v586_v45, 0.0 }
 0x2e1   :  { %v654_v57 = vmul.f32 %v637_v55, %v598_v41 }
 0x2e3   :  { %v661_v63 = vadd.f32 %v660_v60, %v654_v57 }
 0x2e4   :  { %v588_v46 = vpop.f32.mrf.mxu2 }
 0x2e5   :  { %v589_v49 = vadd.f32 %v588_v46, %v525_v36 }
 0x2e7   :  { %v599_v40 = vmax.f32 %v589_v49, 0.0 }
 0x2e9   :  { %v655_v61 = vmul.f32 %v642_v58, %v599_v40 }
 0x2eb   :  { %v662_v2 = vadd.f32 %v661_v63, %v655_v61 }
 0x2ec   :  { %v590_v59 = vpop.f32.mrf.mxu2 }
 0x2ed   :  { %v591_v62 = vadd.f32 %v590_v59, %v530_v50 }
 0x2ef   :  { %v600_v0 = vmax.f32 %v591_v62, 0.0 }
 0x2f1   :  { %v656_v3 = vmul.f32 %v647_v1, %v600_v0 }
 0x2f3   :  { %v663_v4 = vadd.f32 %v662_v2, %v656_v3 }
 0x2f5   :  { %v664_v5 = vrot.slane %v663_v4, 4 }
 0x2f7   :  { %v665_v6 = vadd.f32 %v664_v5, %v663_v4 }
 0x2f9   :  { %v666_v7 = vrot.slane %v665_v6, 2 }
 0x2fb   :  { %v667_v8 = vadd.f32 %v666_v7, %v665_v6 }
 0x2fd   :  { %v668_v10 = vrot.slane %v667_v8, 1 }
 0x2ff   :  { %v669_v12 = vadd.f32 %v668_v10, %v667_v8 }
 0x301   :  { %v677_v13 = vadd.f32 %v676_v11, %v669_v12 }
 0x303   :  { %678 = vst [vmem:[#allocation3] sm:$0x1] %v677_v13 }
 0x304   :  { %689 = dma.vmem_to_hbm [thread:$0]  %s685_s0, 16, %s687_s25, [#allocation4]  }
 0x305   :  { %852 = dma.done.wait [#allocation4], 16  }
 0x306   :  { %853 = vsyncadd [#allocation4], 4294967280 }
 0x307   :  { %694 = vsyncpa [#allocation4], 1 }

</bundles_post_ra>
